<compile_context>
chip_gen: v7x
topology: tpu7x:2x2x1
jax: 0.10.0
libtpu: 0.0.40
codegen_flags: <defaults>
</compile_context>

<pallas_src>
import jax
import jax.numpy as jnp
from jax import lax
from jax.experimental import pallas as pl
from jax.experimental.pallas import tpu as pltpu


def _round_up(x, m):
    return -(-x // m) * m


def _maxpool_kernel(x_ref, o_ref):
    # x_ref: (k, R_tile, LOUT_tile)   o_ref: (R_tile, LOUT_tile)
    # Pure VPU work: (k-1) maximum ops per vreg; binding resource is DMA/HBM.
    k = x_ref.shape[0]
    m = x_ref[0]
    for j in range(1, k):            # unrolled VPU max chain
        m = jnp.maximum(m, x_ref[j])
    o_ref[...] = m.astype(o_ref.dtype)


def _select_tiles(r, l_out, k, itemsize):
    """(8,128)-aligned tiles, k/dtype-aware, bounded by a VMEM buffer budget."""
    lane = 128
    sub = max(8, 32 // itemsize)          # sublane quantum: 8 f32 / 16 bf16 / 32 i8
    r_al = _round_up(r, sub)
    lo_al = _round_up(l_out, lane)

    # Large-tile caps (amortize per-grid-step overhead, esp. v7x); wider tiles
    # for narrow dtypes (same bytes, more elements per vreg row).
    r_tile = min(r_al, 512)
    lo_tile = min(lo_al, 8192 // itemsize)      # 2048 f32 / 4096 bf16 / 8192 i8

    # Double-buffered in+out footprint: 2*(k+1)*r_tile*lo_tile*itemsize <= budget.
    budget = 40 * 1024 * 1024                   # fits v5e/v6e and v7x (<~48 MiB practical)
    cap_elems = budget // (2 * (k + 1) * itemsize)
    while r_tile * lo_tile > cap_elems and lo_tile > lane:
        lo_tile = _round_up(lo_tile // 2, lane)
    while r_tile * lo_tile > cap_elems and r_tile > sub:
        r_tile = _round_up(r_tile // 2, sub)

    # Guarantee >= 2 grid blocks when possible (dual-TensorCore chips + pipelining).
    n_r = -(-r // r_tile)
    n_lo = -(-l_out // lo_tile)
    if n_r * n_lo == 1:
        if lo_al > lane:
            lo_tile = _round_up(-(-lo_al // 2), lane)
        elif r_al > sub:
            r_tile = _round_up(-(-r_al // 2), sub)
    return r_tile, lo_tile


def _maxpool_xla(x, k, pad_left, l_out):
    """Plain-XLA path for tiny inputs where pallas_call fixed overhead dominates."""
    b, c, l = x.shape
    hi = l_out * k - pad_left - l          # may be negative: drops incomplete window
    zero = jnp.zeros((), x.dtype)
    xp = lax.pad(x, zero, ((0, 0, 0), (0, 0, 0), (pad_left, hi, 0)))
    return xp.reshape(b, c, l_out, k).max(axis=-1)


def maxpool1d_pad_same(x, kernel_size, *, force_pallas=None):
    """JAX/Pallas equivalent of MyMaxPool1dPadSame(kernel_size)(x), x:(B,C,L)."""
    b, c, l = x.shape
    k = int(kernel_size)
    if k <= 1:
        return x

    # SAME padding (stride=1, as in the PyTorch module), constant 0.
    stride = 1
    out_dim = (l + stride - 1) // stride
    p = max(0, (out_dim - 1) * stride + k - l)
    pad_left = p // 2
    l_padded = l + p
    # MaxPool1d with default stride == kernel_size; drop incomplete window.
    l_out = (l_padded - k) // k + 1

    r = b * c
    itemsize = x.dtype.itemsize

    # Size-based dispatch: Pallas only pays off for large, lane-dense problems.
    use_pallas = force_pallas
    if use_pallas is None:
        use_pallas = (r >= 8) and (l_out >= 128) and (r * l_out >= 128 * 1024)
    if not use_pallas:
        return _maxpool_xla(x, k, pad_left, l_out)

    r_tile, lo_tile = _select_tiles(r, l_out, k, itemsize)
    r_pad = _round_up(r, r_tile)
    lo_pad = _round_up(l_out, lo_tile)

    # Single-pass repack: ONE lax.pad handles SAME padding, the drop of the
    # incomplete trailing window (negative high pad) and tile padding; the
    # reshape+transpose produces the (k, R_pad, LO_pad) window planes and is
    # fused by XLA with the pad into a single copy.  Padded rows/lanes are
    # sliced off after the kernel, so their content is irrelevant.
    zero = jnp.zeros((), x.dtype)
    hi = lo_pad * k - pad_left - l            # >= -pad_left; may be negative
    xp = lax.pad(x.reshape(r, l), zero, ((0, r_pad - r, 0), (pad_left, hi, 0)))
    xw = jnp.transpose(xp.reshape(r_pad, lo_pad, k), (2, 0, 1))   # (k, R_pad, LO_pad)

    grid = (r_pad // r_tile, lo_pad // lo_tile)

    # k/dtype-aware VMEM budget: double-buffered in+out blocks (+ headroom),
    # capped under v7x's practical ceiling.
    footprint = 2 * (k + 1) * r_tile * lo_tile * itemsize
    vmem_limit = min(48 * 1024 * 1024,
                     max(32 * 1024 * 1024, footprint + 4 * 1024 * 1024))

    cost = pl.CostEstimate(
        flops=(k - 1) * r_pad * lo_pad,
        transcendentals=0,
        bytes_accessed=(k + 1) * r_pad * lo_pad * itemsize,
    )

    out = pl.pallas_call(
        _maxpool_kernel,
        out_shape=jax.ShapeDtypeStruct((r_pad, lo_pad), x.dtype),
        grid=grid,
        in_specs=[
            pl.BlockSpec((k, r_tile, lo_tile), lambda i, j: (0, i, j)),
        ],
        out_specs=pl.BlockSpec((r_tile, lo_tile), lambda i, j: (i, j)),
        compiler_params=pltpu.CompilerParams(
            dimension_semantics=("parallel", "parallel"),
            vmem_limit_bytes=vmem_limit,
        ),
        cost_estimate=cost,
    )(xw)

    return out[:r, :l_out].reshape(b, c, l_out)


def _reference(x, kernel_size):
    """Independent emulation of the PyTorch module (XLA reduce_window path)."""
    k = int(kernel_size)
    if k <= 1:
        return x
    l = x.shape[-1]
    stride = 1
    out_dim = (l + stride - 1) // stride
    p = max(0, (out_dim - 1) * stride + k - l)
    pad_left = p // 2
    pad_right = p - pad_left
    xp = jnp.pad(x, ((0, 0), (0, 0), (pad_left, pad_right)),
                 mode="constant", constant_values=0)
    init = jnp.array(-jnp.inf, dtype=x.dtype)
    return lax.reduce_window(xp, init, lax.max,
                             window_dimensions=(1, 1, k),
                             window_strides=(1, 1, k),
                             padding="VALID")


# TODO(synk): TransformerMILGraph.featurizer / .classifier are arbitrary
# injected nn.Modules (no definition in the spec); only the
# MyMaxPool1dPadSame building block of the TransMIL classifier is kernelized.

if __name__ == "__main__":
    key = jax.random.PRNGKey(0)

    configs = [
        # (B, C, L, kernel_size, force_pallas)
        (2, 4, 16, 3, True),      # tiny; force the Pallas path to exercise the kernel
        (3, 5, 37, 4, True),      # tiny, even kernel; forced Pallas path
        (2, 64, 4096, 3, None),   # large enough that auto-dispatch picks Pallas
        (2, 4, 16, 3, None),      # auto-dispatch -> plain-XLA fallback for tiny input
    ]

    for i, (B, C, L, K, force) in enumerate(configs):
        key, sub = jax.random.split(key)
        x = jax.random.normal(sub, (B, C, L), dtype=jnp.float32)

        out = maxpool1d_pad_same(x, K, force_pallas=force)
        out = jax.block_until_ready(out)

        ref = _reference(x, K)
        assert out.shape == ref.shape, (out.shape, ref.shape)
        assert jnp.allclose(out, ref), f"Pallas output mismatch vs reference (cfg {i})"

    print("KERNEL_OK")
</pallas_src>

<mosaic_0001>
module attributes {stable_mosaic.version = 11 : i64} {
  func.func @_maxpool_kernel(%arg0: i32, %arg1: i32, %arg2: memref<3x8x128xf32, #tpu.memory_space<vmem>>, %arg3: memref<8x128xf32, #tpu.memory_space<vmem>>) attributes {dimension_semantics = [#tpu.dimension_semantics<parallel>, #tpu.dimension_semantics<parallel>], iteration_bounds = array<i64: 1, 1>, scalar_prefetch = 0 : i64, scratch_operands = 0 : i64, tpu.core_type = #tpu.core_type<tc>, window_params = [{transform_indices = @transform_0, window_bounds = array<i64: 3, 8, 128>}, {transform_indices = @transform_1, window_bounds = array<i64: 8, 128>}]} {
    %c0 = arith.constant 0 : index
    %c0_0 = arith.constant 0 : index
    %c0_1 = arith.constant 0 : index
    %0 = vector.load %arg2[%c0, %c0_0, %c0_1] : memref<3x8x128xf32, #tpu.memory_space<vmem>>, vector<1x8x128xf32>
    %1 = vector.shape_cast %0 : vector<1x8x128xf32> to vector<8x128xf32>
    %c1 = arith.constant 1 : index
    %c0_2 = arith.constant 0 : index
    %c0_3 = arith.constant 0 : index
    %2 = vector.load %arg2[%c1, %c0_2, %c0_3] : memref<3x8x128xf32, #tpu.memory_space<vmem>>, vector<1x8x128xf32>
    %3 = vector.shape_cast %2 : vector<1x8x128xf32> to vector<8x128xf32>
    %4 = arith.maximumf %1, %3 : vector<8x128xf32>
    %c2 = arith.constant 2 : index
    %c0_4 = arith.constant 0 : index
    %c0_5 = arith.constant 0 : index
    %5 = vector.load %arg2[%c2, %c0_4, %c0_5] : memref<3x8x128xf32, #tpu.memory_space<vmem>>, vector<1x8x128xf32>
    %6 = vector.shape_cast %5 : vector<1x8x128xf32> to vector<8x128xf32>
    %7 = arith.maximumf %4, %6 : vector<8x128xf32>
    %c0_6 = arith.constant 0 : index
    %c0_7 = arith.constant 0 : index
    %8 = vector.load %arg3[%c0_6, %c0_7] : memref<8x128xf32, #tpu.memory_space<vmem>>, vector<8x128xf32>
    tpu.vector_store %arg3[%c0_6, %c0_7], %7 {strides = array<i32>} : memref<8x128xf32, #tpu.memory_space<vmem>>, vector<8x128xf32>,
    return
  }
  func.func @transform_0(%arg0: i32, %arg1: i32) -> (i32, i32, i32) {
    %c0_i32 = arith.constant 0 : i32
    %c0_i32_0 = arith.constant 0 : i32
    return %c0_i32, %arg0, %arg1 : i32, i32, i32
  }
  func.func @transform_1(%arg0: i32, %arg1: i32) -> (i32, i32) {
    %c0_i32 = arith.constant 0 : i32
    return %arg0, %arg1 : i32, i32
  }
}

</mosaic_0001>

<bundles_post_ra>
// kernel: tpu_custom_call.1
= control target key start
LH: loop header
LB: loop body
LE: loop exit
PB: predicated region body
PF: predicated region fallthrough
CT: control target
= control target key end

     0   :  { %6 = vsyncpa [#allocation3], 0  ;;  %s136_s0 = inlined_call_operand.hbm [shape: f32[3,8,128], index: 0, kind: input, shape index: {}]   ;;  %s137_s1 = inlined_call_operand.hbm [shape: f32[8,128], index: 1, kind: output, shape index: {}]  }
   0x1   :  { %7 = vsyncpa [#allocation4], 0  ;;  %s98_s6 = smov [#allocation2]   ;;  %s50_s10 = scalar_lea.hbm %s136_s0, 384 }
   0x2   :  { %s13_s7 = sshll.u32 %s98_s6, 4  ;;  %p51_p0 = scmp.ne.s32.totalorder %s136_s0, %s50_s10  ;;  %s14_s7 = int_to_ptr.vmem [resolvable:$true] %s13_s7 }
   0x3   :  { %p54_p1 = scmp.lt.u32.totalorder %s50_s10, %s136_s0 }
   0x5   :  { %p56_p2 = pnand %p54_p1, %p51_p0 }
   0x7   :  { %59 = shalt.err (!%p56_p2)
}
   0x8   :  { %s60_s15 = scalar_lea.vmem %s14_s7, 384  ;;  %p65_p4 = scmp.lt.s32.totalorder %s14_s7, %s14_s7 }
   0x9   :  { %p61_p3 = scmp.ne.s32.totalorder %s14_s7, %s60_s15  ;;  %p66_p5 = scmp.lt.s32.totalorder %s60_s15, %s60_s15 }
   0xb   :  { %p67_p6 = por %p66_p5, %p65_p4 }
   0xd   :  { %p68_p7 = pnand %p67_p6, %p61_p3 }
   0xf   :  { %71 = shalt.err (!%p68_p7)
}
  0x10   :  { %s99_s16 = smov 128   ;;  %s100_s17 = smov 8  }
  0x11   :  { %19 = dma.hbm_to_vmem [thread:$0]  %s136_s0, 384, %s14_s7, [#allocation3], %s99_s16, %s99_s16, %s100_s17  }
  0x12   :  { %94 = dma.done.wait [#allocation3], 384  }
  0x13   :  { %95 = vsyncadd [#allocation3], 4294966912  ;;  %v23_v0 = vld [vmem:[#allocation2] sm:$0xff]  ;;  %v25_v1 = vld [vmem:[#allocation2 + $0x8] sm:$0xff]  ;;  %s101_s20 = smov [#allocation5]  }
  0x14   :  { %v28_v2 = vld [vmem:[#allocation2 + $0x10] sm:$0xff]  ;;  %s37_s21 = sshll.u32 %s101_s20, 4  ;;  %v26_v3 = vmax.f32 %v23_v0, %v25_v1  ;;  %s38_s21 = int_to_ptr.vmem [resolvable:$true] %s37_s21 }
  0x15   :  { %s72_s22 = scalar_lea.vmem %s38_s21, 128  ;;  %p77_p9 = scmp.lt.s32.totalorder %s38_s21, %s38_s21 }
  0x16   :  { %v29_v4 = vmax.f32 %v26_v3, %v28_v2  ;;  %p73_p8 = scmp.ne.s32.totalorder %s38_s21, %s72_s22  ;;  %p78_p10 = scmp.lt.s32.totalorder %s72_s22, %s72_s22 }
  0x18   :  { %30 = vst [vmem:[#allocation5] sm:$0xff] %v29_v4  ;;  %p79_p11 = por %p78_p10, %p77_p9 }
  0x1a   :  { %p80_p12 = pnand %p79_p11, %p73_p8 }
  0x1c   :  { %83 = shalt.err (!%p80_p12)
}
  0x1d   :  { %s84_s24 = scalar_lea.hbm %s137_s1, 128 }
  0x1e   :  { %p85_p13 = scmp.ne.s32.totalorder %s137_s1, %s84_s24  ;;  %p88_p0 = scmp.lt.u32.totalorder %s84_s24, %s137_s1 }
  0x20   :  { %p90_p1 = pnand %p88_p0, %p85_p13 }
  0x22   :  { %93 = shalt.err (!%p90_p1)
}
  0x23   :  { %40 = dma.vmem_to_hbm [thread:$0]  %s38_s21, 128, %s137_s1, [#allocation4]  }
  0x24   :  { %96 = dma.done.wait [#allocation4], 128  }
  0x25   :  { %97 = vsyncadd [#allocation4], 4294967168 }
  0x26   :  { %44 = vsyncpa [#allocation3], 1 }
  0x27   :  { %45 = vsyncpa [#allocation4], 1 }

</bundles_post_ra>
